<compile_context>
chip_gen: v5e
topology: v5e:2x2
jax: 0.10.0
libtpu: 0.0.40
codegen_flags: <defaults>
</compile_context>

<pallas_src>
import functools

import jax
import jax.numpy as jnp
from jax.experimental import pallas as pl
from jax.experimental.pallas import tpu as pltpu  # noqa: F401  (kept for TPU backend)

LANE = 128


def _round_up(n, m):
    return ((n + m - 1) // m) * m


def _pad_axis(a, target, axis):
    pad = target - a.shape[axis]
    if pad <= 0:
        return a
    widths = [(0, 0)] * a.ndim
    widths[axis] = (0, pad)
    return jnp.pad(a, widths)


# ----------------------------------------------------------------------------
# Fused kernel: entire encoder in one body.
# refs order: x, (c), W0x, (W0c), b0, [Wi, bi]..., W_heads, b_heads, out
# ----------------------------------------------------------------------------
def _fused_encoder_kernel(*refs, num_mlp_layers, conditional):
    it = iter(refs)
    x = next(it)[...]
    c = next(it)[...] if conditional else None

    # First MLP layer: h = relu(x @ W0x + c @ W0c + b0)   (concat eliminated)
    w0x = next(it)[...]
    h = jnp.dot(x, w0x, preferred_element_type=jnp.float32)
    if conditional:
        w0c = next(it)[...]
        h = h + jnp.dot(c, w0c, preferred_element_type=jnp.float32)
    b0 = next(it)[...]
    h = jnp.maximum(h + b0, 0.0)

    # Remaining MLP layers (Linear + ReLU), all lane-padded to 128.
    for _ in range(num_mlp_layers - 1):
        w = next(it)[...]
        b = next(it)[...]
        h = jnp.maximum(jnp.dot(h, w, preferred_element_type=jnp.float32) + b, 0.0)

    # Merged latent heads: [means | log_vars | zero-pad] in one matmul.
    w_heads = next(it)[...]
    b_heads = next(it)[...]
    out = jnp.dot(h, w_heads, preferred_element_type=jnp.float32) + b_heads

    out_ref = next(it)
    out_ref[...] = out.astype(out_ref.dtype)


# ----------------------------------------------------------------------------
# Parameters
# ----------------------------------------------------------------------------
def init_encoder_params(key, layer_sizes, latent_size, conditional, conditional_size):
    """Deterministic init mimicking nn.Linear default (uniform +-1/sqrt(fan_in)).

    Weights are stored [in, out] (already transposed for the kernel).
    """
    layer_sizes = list(layer_sizes)
    if conditional:
        layer_sizes[0] += conditional_size

    params = {"mlp": []}
    for in_size, out_size in zip(layer_sizes[:-1], layer_sizes[1:]):
        key, kw, kb = jax.random.split(key, 3)
        bound = 1.0 / jnp.sqrt(in_size)
        w = jax.random.uniform(kw, (in_size, out_size), jnp.float32, -bound, bound)
        b = jax.random.uniform(kb, (out_size,), jnp.float32, -bound, bound)
        params["mlp"].append((w, b))

    last = layer_sizes[-1]
    bound = 1.0 / jnp.sqrt(last)
    key, k1, k2, k3, k4 = jax.random.split(key, 5)
    params["w_means"] = jax.random.uniform(k1, (last, latent_size), jnp.float32, -bound, bound)
    params["b_means"] = jax.random.uniform(k2, (latent_size,), jnp.float32, -bound, bound)
    params["w_logvar"] = jax.random.uniform(k3, (last, latent_size), jnp.float32, -bound, bound)
    params["b_logvar"] = jax.random.uniform(k4, (latent_size,), jnp.float32, -bound, bound)
    return params


def prepare_fused_params(params, *, conditional, input_size):
    """One-time (setup-time) transform: split first layer, merge heads, pad to lane width."""
    mlp = params["mlp"]
    fused = {"num_mlp_layers": len(mlp)}

    w0, b0 = mlp[0]                       # [in0(+cond), h1]
    h_pad = _round_up(w0.shape[1], LANE)
    if conditional:
        fused["w0x"] = _pad_axis(w0[:input_size], h_pad, 1)
        fused["w0c"] = _pad_axis(w0[input_size:], h_pad, 1)
    else:
        fused["w0x"] = _pad_axis(w0, h_pad, 1)
    fused["b0"] = _pad_axis(b0.reshape(1, -1), h_pad, 1)

    layers = []
    prev_pad = h_pad
    for (w, b) in mlp[1:]:
        out_pad = _round_up(w.shape[1], LANE)
        w_p = _pad_axis(_pad_axis(w, prev_pad, 0), out_pad, 1)   # zero rows/cols
        b_p = _pad_axis(b.reshape(1, -1), out_pad, 1)
        layers.append((w_p, b_p))
        prev_pad = out_pad
    fused["layers"] = layers

    # Merge the two heads: W_heads [last, 2*latent], then pad to lane width.
    w_heads = jnp.concatenate([params["w_means"], params["w_logvar"]], axis=1)
    b_heads = jnp.concatenate([params["b_means"], params["b_logvar"]], axis=0)
    heads_pad = _round_up(w_heads.shape[1], LANE)
    fused["w_heads"] = _pad_axis(_pad_axis(w_heads, prev_pad, 0), heads_pad, 1)
    fused["b_heads"] = _pad_axis(b_heads.reshape(1, -1), heads_pad, 1)
    return fused


# ----------------------------------------------------------------------------
# Forward (single fused pallas_call)
# ----------------------------------------------------------------------------
def encoder_forward(fused, x, c=None, *, conditional=False, latent_size=16):
    n = x.shape[0]
    out_pad = fused["b_heads"].shape[1]

    inputs = [x]
    if conditional:
        inputs.append(c)
    inputs.append(fused["w0x"])
    if conditional:
        inputs.append(fused["w0c"])
    inputs.append(fused["b0"])
    for (w, b) in fused["layers"]:
        inputs.extend([w, b])
    inputs.extend([fused["w_heads"], fused["b_heads"]])

    in_specs = [pl.BlockSpec(a.shape, lambda: (0, 0)) for a in inputs]

    out = pl.pallas_call(
        functools.partial(
            _fused_encoder_kernel,
            num_mlp_layers=fused["num_mlp_layers"],
            conditional=conditional,
        ),
        out_shape=jax.ShapeDtypeStruct((n, out_pad), x.dtype),
        in_specs=in_specs,
        out_specs=pl.BlockSpec((n, out_pad), lambda: (0, 0)),
    )(*inputs)

    means = out[:, :latent_size]
    log_vars = out[:, latent_size:2 * latent_size]
    return means, log_vars


# Pure-JAX reference (unpadded, un-fused) for a correctness check.
def encoder_ref(params, x, c=None, *, conditional=False):
    if conditional:
        x = jnp.concatenate((x, c), axis=-1)
    h = x
    for (w, b) in params["mlp"]:
        h = jnp.maximum(h @ w + b, 0.0)
    means = h @ params["w_means"] + params["b_means"]
    log_vars = h @ params["w_logvar"] + params["b_logvar"]
    return means, log_vars


if __name__ == "__main__":
    # Small config consistent with the module's __init__:
    #   Encoder(layer_sizes=[32, 64, 32], latent_size=16,
    #           conditional=True, conditional_size=8)
    layer_sizes = [32, 64, 32]
    latent_size = 16
    conditional = True
    conditional_size = 8
    batch = 8

    key = jax.random.PRNGKey(0)
    kp, kx, kc = jax.random.split(key, 3)
    params = init_encoder_params(kp, layer_sizes, latent_size, conditional, conditional_size)
    fused = prepare_fused_params(params, conditional=conditional, input_size=layer_sizes[0])

    x = jax.random.normal(kx, (batch, layer_sizes[0]), jnp.float32)
    c = jax.random.normal(kc, (batch, conditional_size), jnp.float32)

    means, log_vars = encoder_forward(
        fused, x, c, conditional=conditional, latent_size=latent_size
    )
    jax.block_until_ready((means, log_vars))

    means_ref, log_vars_ref = encoder_ref(params, x, c, conditional=conditional)
    assert means.shape == (batch, latent_size) and log_vars.shape == (batch, latent_size)
    assert jnp.allclose(means, means_ref, atol=1e-5, rtol=1e-5)
    assert jnp.allclose(log_vars, log_vars_ref, atol=1e-5, rtol=1e-5)

    print("KERNEL_OK")
</pallas_src>

<mosaic_0001>
module attributes {stable_mosaic.version = 11 : i64} {
  func.func @_fused_encoder_kernel(%arg0: memref<8x32xf32, #tpu.memory_space<vmem>>, %arg1: memref<8x8xf32, #tpu.memory_space<vmem>>, %arg2: memref<32x128xf32, #tpu.memory_space<vmem>>, %arg3: memref<8x128xf32, #tpu.memory_space<vmem>>, %arg4: memref<1x128xf32, #tpu.memory_space<vmem>>, %arg5: memref<128x128xf32, #tpu.memory_space<vmem>>, %arg6: memref<1x128xf32, #tpu.memory_space<vmem>>, %arg7: memref<128x128xf32, #tpu.memory_space<vmem>>, %arg8: memref<1x128xf32, #tpu.memory_space<vmem>>, %arg9: memref<8x128xf32, #tpu.memory_space<vmem>>) attributes {dimension_semantics = [], scalar_prefetch = 0 : i64, scratch_operands = 0 : i64, tpu.core_type = #tpu.core_type<tc>} {
    %c0 = arith.constant 0 : index
    %c0_0 = arith.constant 0 : index
    %0 = vector.load %arg0[%c0, %c0_0] : memref<8x32xf32, #tpu.memory_space<vmem>>, vector<8x32xf32>
    %c0_1 = arith.constant 0 : index
    %c0_2 = arith.constant 0 : index
    %1 = vector.load %arg1[%c0_1, %c0_2] : memref<8x8xf32, #tpu.memory_space<vmem>>, vector<8x8xf32>
    %c0_3 = arith.constant 0 : index
    %c0_4 = arith.constant 0 : index
    %2 = vector.load %arg2[%c0_3, %c0_4] : memref<32x128xf32, #tpu.memory_space<vmem>>, vector<32x128xf32>
    %cst = arith.constant dense<0.000000e+00> : vector<8x128xf32>
    %3 = tpu.matmul %0, %2, %cst {dimension_numbers = #tpu.dot_dimension_numbers<[1], [0], [0], [1], [0, 0, 1, 1], [], []>} : vector<8x32xf32>, vector<32x128xf32>, vector<8x128xf32> -> vector<8x128xf32>
    %c0_5 = arith.constant 0 : index
    %c0_6 = arith.constant 0 : index
    %4 = vector.load %arg3[%c0_5, %c0_6] : memref<8x128xf32, #tpu.memory_space<vmem>>, vector<8x128xf32>
    %cst_7 = arith.constant dense<0.000000e+00> : vector<8x128xf32>
    %5 = tpu.matmul %1, %4, %cst_7 {dimension_numbers = #tpu.dot_dimension_numbers<[1], [0], [0], [1], [0, 0, 1, 1], [], []>} : vector<8x8xf32>, vector<8x128xf32>, vector<8x128xf32> -> vector<8x128xf32>
    %6 = arith.addf %3, %5 : vector<8x128xf32>
    %c0_8 = arith.constant 0 : index
    %c0_9 = arith.constant 0 : index
    %7 = vector.load %arg4[%c0_8, %c0_9] : memref<1x128xf32, #tpu.memory_space<vmem>>, vector<1x128xf32>
    %8 = vector.broadcast %7 : vector<1x128xf32> to vector<8x128xf32>
    %9 = arith.addf %6, %8 : vector<8x128xf32>
    %cst_10 = arith.constant 0.000000e+00 : f32
    %10 = vector.broadcast %cst_10 : f32 to vector<8x128xf32>
    %11 = arith.maximumf %9, %10 : vector<8x128xf32>
    %c0_11 = arith.constant 0 : index
    %c0_12 = arith.constant 0 : index
    %12 = vector.load %arg5[%c0_11, %c0_12] : memref<128x128xf32, #tpu.memory_space<vmem>>, vector<128x128xf32>
    %c0_13 = arith.constant 0 : index
    %c0_14 = arith.constant 0 : index
    %13 = vector.load %arg6[%c0_13, %c0_14] : memref<1x128xf32, #tpu.memory_space<vmem>>, vector<1x128xf32>
    %cst_15 = arith.constant dense<0.000000e+00> : vector<8x128xf32>
    %14 = tpu.matmul %11, %12, %cst_15 {dimension_numbers = #tpu.dot_dimension_numbers<[1], [0], [0], [1], [0, 0, 1, 1], [], []>} : vector<8x128xf32>, vector<128x128xf32>, vector<8x128xf32> -> vector<8x128xf32>
    %15 = vector.broadcast %13 : vector<1x128xf32> to vector<8x128xf32>
    %16 = arith.addf %14, %15 : vector<8x128xf32>
    %cst_16 = arith.constant 0.000000e+00 : f32
    %17 = vector.broadcast %cst_16 : f32 to vector<8x128xf32>
    %18 = arith.maximumf %16, %17 : vector<8x128xf32>
    %c0_17 = arith.constant 0 : index
    %c0_18 = arith.constant 0 : index
    %19 = vector.load %arg7[%c0_17, %c0_18] : memref<128x128xf32, #tpu.memory_space<vmem>>, vector<128x128xf32>
    %c0_19 = arith.constant 0 : index
    %c0_20 = arith.constant 0 : index
    %20 = vector.load %arg8[%c0_19, %c0_20] : memref<1x128xf32, #tpu.memory_space<vmem>>, vector<1x128xf32>
    %cst_21 = arith.constant dense<0.000000e+00> : vector<8x128xf32>
    %21 = tpu.matmul %18, %19, %cst_21 {dimension_numbers = #tpu.dot_dimension_numbers<[1], [0], [0], [1], [0, 0, 1, 1], [], []>} : vector<8x128xf32>, vector<128x128xf32>, vector<8x128xf32> -> vector<8x128xf32>
    %22 = vector.broadcast %20 : vector<1x128xf32> to vector<8x128xf32>
    %23 = arith.addf %21, %22 : vector<8x128xf32>
    %c0_22 = arith.constant 0 : index
    %c0_23 = arith.constant 0 : index
    %24 = vector.load %arg9[%c0_22, %c0_23] : memref<8x128xf32, #tpu.memory_space<vmem>>, vector<8x128xf32>
    tpu.vector_store %arg9[%c0_22, %c0_23], %23 {strides = array<i32>} : memref<8x128xf32, #tpu.memory_space<vmem>>, vector<8x128xf32>,
    return
  }
}

</mosaic_0001>

<bundles_post_ra>
// kernel: tpu_custom_call.1
= control target key start
LH: loop header
LB: loop body
LE: loop exit
PB: predicated region body
PF: predicated region fallthrough
CT: control target
= control target key end

     0   :  { %14 = vsyncpa [#allocation3], 0  ;;  %s565_s0 = inlined_call_operand.hbm [shape: f32[8,32], index: 0, kind: input, shape index: {}]   ;;  %s566_s1 = inlined_call_operand.hbm [shape: f32[8,8], index: 1, kind: input, shape index: {}]   ;;  %s567_s2 = inlined_call_operand.hbm [shape: f32[32,128], index: 2, kind: input, shape index: {}]   ;;  %s568_s3 = inlined_call_operand.hbm [shape: f32[8,128], index: 3, kind: input, shape index: {}]   ;;  %s569_s4 = inlined_call_operand.vmem [shape: f32[1,128], index: 4, kind: input, shape index: {}]   ;;  %s570_s5 = inlined_call_operand.hbm [shape: f32[128,128], index: 5, kind: input, shape index: {}]   ;;  %s571_s6 = inlined_call_operand.vmem [shape: f32[1,128], index: 6, kind: input, shape index: {}]   ;;  %s572_s7 = inlined_call_operand.hbm [shape: f32[128,128], index: 7, kind: input, shape index: {}]   ;;  %s573_s8 = inlined_call_operand.vmem [shape: f32[1,128], index: 8, kind: input, shape index: {}]   ;;  %s574_s9 = inlined_call_operand.hbm [shape: f32[8,128], index: 9, kind: output, shape index: {}]  }
   0x1   :  { %15 = vsyncpa [#allocation6], 0 }
   0x2   :  { %16 = vsyncpa [#allocation9], 0 }
   0x3   :  { %17 = vsyncpa [#allocation12], 0  ;;  %s35_s11 = sshll.u32 %s566_s1, 4  ;;  %s36_s11 = int_to_ptr.hbm [resolvable:$true] %s35_s11 }
   0x4   :  { %18 = vsyncpa [#allocation4], 0  ;;  %s476_s12 = smov [#allocation5]   ;;  %s59_s16 = sshll.u32 %s568_s3, 4  ;;  %s60_s16 = int_to_ptr.hbm [resolvable:$true] %s59_s16 }
   0x5   :  { %s37_s13 = sshll.u32 %s476_s12, 4  ;;  %s477_s17 = smov [#allocation8]   ;;  %s38_s13 = int_to_ptr.vmem [resolvable:$true] %s37_s13 }
   0x6   :  { %40 = dma.hbm_to_vmem [thread:$0]  %s36_s11, 128, %s38_s13, [#allocation6]  }
   0x7   :  { %s61_s18 = sshll.u32 %s477_s17, 4  ;;  %s24_s21 = sshll.u32 %s565_s0, 4  ;;  %s62_s18 = int_to_ptr.vmem [resolvable:$true] %s61_s18  ;;  %s25_s21 = int_to_ptr.hbm [resolvable:$true] %s24_s21 }
   0x8   :  { %64 = dma.hbm_to_vmem [thread:$0]  %s60_s16, 128, %s62_s18, [#allocation9]  }
   0x9   :  { %s45_s23 = sshll.u32 %s567_s2, 4  ;;  %s478_s24 = smov [#allocation2]   ;;  %s46_s23 = int_to_ptr.hbm [resolvable:$true] %s45_s23 }
   0xa   :  { %s26_s25 = sshll.u32 %s478_s24, 4  ;;  %s479_s3 = smov [#allocation7]   ;;  %s27_s25 = int_to_ptr.vmem [resolvable:$true] %s26_s25 }
   0xb   :  { %29 = dma.hbm_to_vmem [thread:$0]  %s25_s21, 128, %s27_s25, [#allocation3]  }
   0xc   :  { %s47_s26 = sshll.u32 %s479_s3, 4  ;;  %s480_s27 = smov 128   ;;  %s48_s26 = int_to_ptr.vmem [resolvable:$true] %s47_s26 }
   0xd   :  { %s481_s28 = smov 8   ;;  %s71_s30 = sshll.u32 %s570_s5, 4  ;;  %s72_s30 = int_to_ptr.hbm [resolvable:$true] %s71_s30 }
   0xe   :  { %53 = dma.hbm_to_vmem [thread:$0]  %s46_s23, 512, %s48_s26, [#allocation6], %s480_s27, %s480_s27, %s481_s28  }
   0xf   :  { %s482_s10 = smov [#allocation10]   ;;  %s86_s13 = sshll.u32 %s572_s7, 4  ;;  %s87_s13 = int_to_ptr.hbm [resolvable:$true] %s86_s13 }
  0x10   :  { %s73_s11 = sshll.u32 %s482_s10, 4  ;;  %s483_s14 = smov [#allocation11]   ;;  %s74_s11 = int_to_ptr.vmem [resolvable:$true] %s73_s11 }
  0x11   :  { %79 = dma.hbm_to_vmem [thread:$0]  %s72_s30, 2048, %s74_s11, [#allocation9], %s480_s27, %s480_s27, %s481_s28  }
  0x12   :  { %s88_s15 = sshll.u32 %s483_s14, 4  ;;  %s89_s15 = int_to_ptr.vmem [resolvable:$true] %s88_s15 }
  0x13   :  { %94 = dma.hbm_to_vmem [thread:$0]  %s87_s13, 2048, %s89_s15, [#allocation12], %s480_s27, %s480_s27, %s481_s28  }
  0x14   :  { %466 = dma.done.wait [#allocation3], 128  }
  0x15   :  { %467 = vsyncadd [#allocation3], 4294967168 }
  0x16   :  { %468 = dma.done.wait [#allocation6], 640  }
  0x17   :  { %469 = vsyncadd [#allocation6], 4294966656 }
  0x18   :  { %470 = dma.done.wait [#allocation9], 2176  }
  0x19   :  { %471 = vsyncadd [#allocation9], 4294965120 }
  0x1a   :  { %472 = dma.done.wait [#allocation12], 2048  }
  0x1b   :  { %473 = vsyncadd [#allocation12], 4294965248  ;;  %v126_v0 = vld [vmem:[#allocation7 + $0x18] sm:$0xff]  ;;  %v125_v1 = vld [vmem:[#allocation7 + $0x10] sm:$0xff]  ;;  %vm128_vm0 = vcmask 64512   ;;  %vm152_vm1 = vcmask 261120  }
  0x1c   :  { %168 = vmatpush.msra.mxu1 %v126_v0  ;;  %v127_v2 = vld [vmem:[#allocation8] sm:$0xff]  ;;  %v122_v3 = vld [vmem:[#allocation5] sm:$0xff]  ;;  %v124_v4 = vld [vmem:[#allocation7 + $0x8] sm:$0xff]  ;;  %s484_s19 = smov [#allocation13]   ;;  %s271_s22 = sshll.u32 %s574_s9, 4  ;;  %s272_s22 = int_to_ptr.hbm [resolvable:$true] %s271_s22 }
  0x1d   :  { %147 = vmatpush.msra.mxu0 %v127_v2  ;;  %v197_v5 = vld [vmem:[#allocation10 + $0x78] sm:$0xff]  ;;  %v196_v6 = vld [vmem:[#allocation10 + $0x70] sm:$0xff]  ;;  %v121_v8 = vld [vmem:[#allocation2] sm:$0xff]  ;;  %s269_s20 = sshll.u32 %s484_s19, 4  ;;  %s270_s20 = int_to_ptr.vmem [resolvable:$true] %s269_s20 }
  0x1e   :  { %169 = vmatpush.msra.mxu1 %v125_v1  ;;  %284 = vmatmul.msk.f32.vlgmr.msra.gmra.mxu0 %vm128_vm0, %v122_v3  ;;  %v123_v7 = vld [vmem:[#allocation7] sm:$0xff]  ;;  %v195_v9 = vld [vmem:[#allocation10 + $0x68] sm:$0xff]  ;;  %v194_v10 = vld [vmem:[#allocation10 + $0x60] sm:$0xff] }
  0x1f   :  { %202 = vmatpush.msra.mxu2 %v197_v5  ;;  %v193_v11 = vld [vmem:[#allocation10 + $0x58] sm:$0xff]  ;;  %v192_v12 = vld [vmem:[#allocation10 + $0x50] sm:$0xff]  ;;  %v191_v13 = vld [vmem:[#allocation10 + $0x48] sm:$0xff] }
  0x20   :  { %170 = vmatpush.msra.mxu1 %v124_v4  ;;  %v190_v14 = vld [vmem:[#allocation10 + $0x40] sm:$0xff]  ;;  %v189_v15 = vld [vmem:[#allocation10 + $0x38] sm:$0xff]  ;;  %v188_v16 = vld [vmem:[#allocation10 + $0x30] sm:$0xff] }
  0x21   :  { %203 = vmatpush.msra.mxu2 %v196_v6  ;;  %v187_v17 = vld [vmem:[#allocation10 + $0x28] sm:$0xff]  ;;  %v186_v18 = vld [vmem:[#allocation10 + $0x20] sm:$0xff]  ;;  %v185_v19 = vld [vmem:[#allocation10 + $0x18] sm:$0xff] }
  0x22   :  { %171 = vmatpush.msra.mxu1 %v123_v7  ;;  %v184_v20 = vld [vmem:[#allocation10 + $0x10] sm:$0xff]  ;;  %v183_v21 = vld [vmem:[#allocation10 + $0x8] sm:$0xff]  ;;  %v182_v22 = vld [vmem:[#allocation10] sm:$0xff] }
  0x23   :  { %285 = vmatmul.msk.f32.vlgmr.msra.gmra.mxu1 %vm152_vm1, %v121_v8  ;;  %204 = vmatpush.msra.mxu2 %v195_v9  ;;  %v238_v23 = vld [vmem:[#allocation11 + $0x78] sm:$0xff]  ;;  %v237_v24 = vld [vmem:[#allocation11 + $0x70] sm:$0xff]  ;;  %v236_v25 = vld [vmem:[#allocation11 + $0x68] sm:$0xff] }
  0x24   :  { %243 = vmatpush.msra.mxu3 %v238_v23  ;;  %v235_v26 = vld [vmem:[#allocation11 + $0x60] sm:$0xff]  ;;  %v234_v27 = vld [vmem:[#allocation11 + $0x58] sm:$0xff]  ;;  %v233_v28 = vld [vmem:[#allocation11 + $0x50] sm:$0xff] }
  0x25   :  { %205 = vmatpush.msra.mxu2 %v194_v10  ;;  %v232_v29 = vld [vmem:[#allocation11 + $0x48] sm:$0xff]  ;;  %v231_v30 = vld [vmem:[#allocation11 + $0x40] sm:$0xff]  ;;  %v230_v31 = vld [vmem:[#allocation11 + $0x38] sm:$0xff] }
  0x26   :  { %244 = vmatpush.msra.mxu3 %v237_v24  ;;  %v229_v32 = vld [vmem:[#allocation11 + $0x30] sm:$0xff]  ;;  %v228_v33 = vld [vmem:[#allocation11 + $0x28] sm:$0xff]  ;;  %v227_v34 = vld [vmem:[#allocation11 + $0x20] sm:$0xff] }
  0x27   :  { %206 = vmatpush.msra.mxu2 %v193_v11  ;;  %v226_v35 = vld [vmem:[#allocation11 + $0x18] sm:$0xff]  ;;  %v295_v37 = vld [vmem:[%s569_s4] ss:$0 sm:$0xff]  ;;  %v225_v42 = vld [vmem:[#allocation11 + $0x10] sm:$0xff] }
  0x28   :  { %245 = vmatpush.msra.mxu3 %v236_v25  ;;  %v224_v43 = vld [vmem:[#allocation11 + $0x8] sm:$0xff]  ;;  %v223_v44 = vld [vmem:[#allocation11] sm:$0xff] }
  0x29   :  { %207 = vmatpush.msra.mxu2 %v192_v12  ;;  %v296_v45 = vld [vmem:[%s571_s6] ss:$0 sm:$0xff] }
  0x2a   :  { %246 = vmatpush.msra.mxu3 %v235_v26  ;;  %v297_v49 = vld [vmem:[%s573_s8] ss:$0 sm:$0xff] }
  0x2b   :  { %208 = vmatpush.msra.mxu2 %v191_v13 }
  0x2c   :  { %247 = vmatpush.msra.mxu3 %v234_v27 }
  0x2d   :  { %209 = vmatpush.msra.mxu2 %v190_v14 }
  0x2e   :  { %248 = vmatpush.msra.mxu3 %v233_v28 }
  0x2f   :  { %210 = vmatpush.msra.mxu2 %v189_v15 }
  0x30   :  { %249 = vmatpush.msra.mxu3 %v232_v29 }
  0x31   :  { %211 = vmatpush.msra.mxu2 %v188_v16 }
  0x32   :  { %250 = vmatpush.msra.mxu3 %v231_v30 }
  0x33   :  { %212 = vmatpush.msra.mxu2 %v187_v17 }
  0x34   :  { %251 = vmatpush.msra.mxu3 %v230_v31 }
  0x35   :  { %213 = vmatpush.msra.mxu2 %v186_v18 }
  0x36   :  { %252 = vmatpush.msra.mxu3 %v229_v32 }
  0x37   :  { %214 = vmatpush.msra.mxu2 %v185_v19 }
  0x38   :  { %253 = vmatpush.msra.mxu3 %v228_v33 }
  0x39   :  { %215 = vmatpush.msra.mxu2 %v184_v20 }
  0x3a   :  { %254 = vmatpush.msra.mxu3 %v227_v34 }
  0x3b   :  { %216 = vmatpush.msra.mxu2 %v183_v21 }
  0x3c   :  { %255 = vmatpush.msra.mxu3 %v226_v35 }
  0x3d   :  { %217 = vmatpush.msra.mxu2 %v182_v22 }
  0x3e   :  { %256 = vmatpush.msra.mxu3 %v225_v42 }
  0x40   :  { %257 = vmatpush.msra.mxu3 %v224_v43 }
  0x42   :  { %258 = vmatpush.msra.mxu3 %v223_v44 }
  0x9b   :  { %v149_v36 = vpop.f32.mrf.mxu0 }
  0xa0   :  { %v173_v38 = vpop.f32.mrf.mxu1 }
  0xa1   :  { %v174_v39 = vadd.f32 %v173_v38, %v149_v36 }
  0xa3   :  { %v180_v40 = vadd.f32 %v295_v37, %v174_v39 }
  0xa5   :  { %v181_v41 = vmax.f32 %v180_v40, 0.0 }
  0xa7   :  { %218 = vmatmul.f32.vlgmr.msra.gmra.mxu2 %v181_v41 }
 0x12a   :  { %v219_v46 = vpop.f32.mrf.mxu2 }
 0x12b   :  { %v220_v47 = vadd.f32 %v296_v45, %v219_v46 }
 0x12d   :  { %v222_v48 = vmax.f32 %v220_v47, 0.0 }
 0x12f   :  { %259 = vmatmul.f32.vlgmr.msra.gmra.mxu3 %v222_v48 }
 0x1b2   :  { %v260_v50 = vpop.f32.mrf.mxu3 }
 0x1b3   :  { %v261_v51 = vadd.f32 %v297_v49, %v260_v50 }
 0x1b5   :  { %263 = vst [vmem:[#allocation13] sm:$0xff] %v261_v51 }
 0x1b6   :  { %274 = dma.vmem_to_hbm [thread:$0]  %s270_s20, 128, %s272_s22, [#allocation4]  }
 0x1b7   :  { %474 = dma.done.wait [#allocation4], 128  }
 0x1b8   :  { %475 = vsyncadd [#allocation4], 4294967168 }
 0x1b9   :  { %279 = vsyncpa [#allocation3], 1 }
 0x1ba   :  { %280 = vsyncpa [#allocation6], 1 }
 0x1bb   :  { %281 = vsyncpa [#allocation9], 1 }
 0x1bc   :  { %282 = vsyncpa [#allocation12], 1 }
 0x1bd   :  { %283 = vsyncpa [#allocation4], 1 }

</bundles_post_ra>
